<compile_context>
chip_gen: v7x
topology: tpu7x:2x2x1
jax: 0.10.0
libtpu: 0.0.40
codegen_flags: <defaults>
</compile_context>

<pallas_src>
import math

import jax
import jax.numpy as jnp
import numpy as np
from jax.experimental import pallas as pl
from jax.experimental.pallas import tpu as pltpu


def _round_up(x, m):
    return ((x + m - 1) // m) * m


def _vmem_capacity_bytes():
    try:
        return int(pltpu.get_tpu_info().vmem_capacity_bytes)
    except Exception:
        return 64 * 1024 * 1024  # conservative default (v7x per-TensorCore VMEM)


def _choose_tiles(M, Kp, N, n_outs, in_bytes, out_bytes, vmem_budget):
    """Pick (tm, tk, tn, est_vmem).  tk always divides Kp (Kp is a mult. of 128)."""
    Mc = _round_up(max(M, 1), 16)   # 16-sublane aligned (valid for bf16 and f32)
    Nc = _round_up(N, 128)

    # Larger tiles for narrower dtypes: less HBM re-streaming of x / W and
    # fewer grid steps (~0.35 us/step).  Caps keep double-buffered tiles well
    # inside the scoped-VMEM budget even on v7x (64 MiB physical VMEM).
    tm_cap = 512
    tn_cap = 512 if in_bytes >= 4 else 1024
    tk_cap = 1024 if in_bytes >= 4 else 2048

    def fit_tk(cap):
        tk = max(128, min(cap, Kp))
        tk -= tk % 128
        while Kp % tk:
            tk -= 128
        return tk

    tm = min(tm_cap, Mc)
    tn = min(tn_cap, Nc)
    tk = fit_tk(tk_cap)

    def vmem_use(tm_, tk_, tn_):
        # double-buffered x / W^T tiles + double-buffered output tile(s)
        # + f32 accumulator scratch (epilogue vectors are negligible).
        return (2 * (tm_ * tk_ + tk_ * tn_) * in_bytes
                + 2 * n_outs * tm_ * tn_ * out_bytes
                + tm_ * tn_ * 4)

    while vmem_use(tm, tk, tn) > vmem_budget:
        if tk > 256:
            tk = fit_tk(tk // 2)
        elif tn > 256:
            tn = _round_up(tn // 2, 128)
        elif tm > 256:
            tm = _round_up(tm // 2, 16)
        elif tk > 128:
            tk = fit_tk(tk // 2)
        elif tn > 128:
            tn = _round_up(tn // 2, 128)
        elif tm > 16:
            tm = _round_up(tm // 2, 16)
        else:
            break

    # v7x has 2 TensorCores sharded over the "parallel" grid axes: keep >= 2
    # parallel blocks whenever the tiles allow it so one core is not idle
    # (near-free on single-core v5e/v6e).
    if pl.cdiv(M, tm) * pl.cdiv(N, tn) < 2:
        if tn >= 256:
            tn = _round_up(tn // 2, 128)
        elif tm >= 32:
            tm = _round_up(tm // 2, 16)

    return tm, tk, tn, vmem_use(tm, tk, tn)


# ---------------------------------------------------------------------------
# Fused linear-excitability kernel:  act((x @ W^T) * excit + bias_plus_phantom)
# ---------------------------------------------------------------------------
def _make_fc_kernel(act, has_exc, has_bias, with_pre, precision,
                    negative_slope=0.01):
    def kernel(*refs):
        refs = list(refs)
        x_ref = refs.pop(0)
        wt_ref = refs.pop(0)
        exc_ref = refs.pop(0) if has_exc else None
        bias_ref = refs.pop(0) if has_bias else None
        out_ref = refs.pop(0)
        pre_ref = refs.pop(0) if with_pre else None
        acc_ref = refs.pop(0)

        k = pl.program_id(2)

        @pl.when(k == 0)
        def _():
            acc_ref[...] = jnp.zeros_like(acc_ref)

        acc_ref[...] += jnp.dot(
            x_ref[...], wt_ref[...],
            preferred_element_type=jnp.float32, precision=precision)

        @pl.when(k == pl.num_programs(2) - 1)
        def _():
            pre = acc_ref[...]
            if exc_ref is not None:
                pre = pre * exc_ref[...]
            if bias_ref is not None:
                pre = pre + bias_ref[...]
            if pre_ref is not None:
                pre_ref[...] = pre.astype(pre_ref.dtype)
            if act == "relu":
                y = jnp.maximum(pre, 0.0)
            elif act == "leakyrelu":
                y = jnp.where(pre >= 0.0, pre, negative_slope * pre)
            elif act == "sigmoid":
                y = jax.nn.sigmoid(pre)
            else:  # "none"
                y = pre
            out_ref[...] = y.astype(out_ref.dtype)

    return kernel


def pallas_fc(x, weight_t, excitability=None, bias=None, act="none",
              return_pre=False):
    """Fused y = act((x @ W^T) * excitability + bias).

    x:        (..., K) activations (bf16 recommended for speed; f32 supported)
    weight_t: (K, N) or (round_up(K,128), N) pre-transposed (K-padded) weight,
              ideally stored in the same dtype as the activations
    excitability / bias: (N,) or None  (bias may already include phantom)
    """
    out_dtype = x.dtype
    lead = x.shape[:-1]
    K = x.shape[-1]
    Kw, N = weight_t.shape
    M = int(np.prod(lead)) if lead else 1
    Kp = _round_up(K, 128)
    assert Kw in (K, Kp), (Kw, K, Kp)

    x2 = x.reshape((M, K))
    compute_dtype = x2.dtype
    if weight_t.dtype != compute_dtype:
        # One-off cast; store the layer's weights in the activation dtype to avoid it.
        weight_t = weight_t.astype(compute_dtype)

    # f32 inputs -> full-precision f32 matmul (matches the PyTorch reference);
    # bf16 inputs run the MXU at full bf16 rate with an f32 accumulator.
    precision = (jax.lax.Precision.HIGHEST
                 if compute_dtype == jnp.float32 else jax.lax.Precision.DEFAULT)

    # Only the reduction (K) axis needs zero padding (correct accumulation);
    # ragged M / N edges are handled by Pallas' masked partial blocks, so no
    # pad / crop HBM passes are added for them.
    if K != Kp:
        x2 = jnp.pad(x2, ((0, 0), (0, Kp - K)))
    if Kw != Kp:
        weight_t = jnp.pad(weight_t, ((0, Kp - Kw), (0, 0)))

    has_exc = excitability is not None
    has_bias = bias is not None
    n_outs = 2 if return_pre else 1

    in_bytes = jnp.dtype(compute_dtype).itemsize
    out_bytes = jnp.dtype(out_dtype).itemsize
    vmem_cap = _vmem_capacity_bytes()
    tm, tk, tn, vmem_est = _choose_tiles(
        M, Kp, N, n_outs, in_bytes, out_bytes,
        vmem_budget=int(0.45 * vmem_cap))

    grid = (pl.cdiv(M, tm), pl.cdiv(N, tn), Kp // tk)

    in_specs = [
        pl.BlockSpec((tm, tk), lambda i, j, k: (i, k)),
        pl.BlockSpec((tk, tn), lambda i, j, k: (k, j)),
    ]
    operands = [x2, weight_t]
    vec_spec = pl.BlockSpec((1, tn), lambda i, j, k: (0, j))
    if has_exc:
        in_specs.append(vec_spec)
        operands.append(excitability.astype(jnp.float32).reshape(1, N))
    if has_bias:
        in_specs.append(vec_spec)
        operands.append(bias.astype(jnp.float32).reshape(1, N))

    out_spec = pl.BlockSpec((tm, tn), lambda i, j, k: (i, j))
    out_shape = jax.ShapeDtypeStruct((M, N), out_dtype)
    if return_pre:
        out_shapes = (out_shape, jax.ShapeDtypeStruct((M, N), out_dtype))
        out_specs = (out_spec, out_spec)
    else:
        out_shapes = out_shape
        out_specs = out_spec

    cost = pl.CostEstimate(
        flops=2 * M * K * N,
        transcendentals=M * N if act == "sigmoid" else 0,
        bytes_accessed=(M * Kp + Kp * N) * in_bytes + n_outs * M * N * out_bytes,
    )

    res = pl.pallas_call(
        _make_fc_kernel(act, has_exc, has_bias, return_pre, precision),
        out_shape=out_shapes,
        grid_spec=pltpu.PrefetchScalarGridSpec(
            num_scalar_prefetch=0,
            grid=grid,
            in_specs=in_specs,
            out_specs=out_specs,
            scratch_shapes=[pltpu.VMEM((tm, tn), jnp.float32)],
        ),
        compiler_params=pltpu.CompilerParams(
            dimension_semantics=("parallel", "parallel", "arbitrary"),
            vmem_limit_bytes=int(min(vmem_cap - (8 << 20),
                                     max(32 << 20, 2 * vmem_est + (4 << 20)))),
        ),
        cost_estimate=cost,
    )(*operands)

    def _shape(a):
        return a.reshape(lead + (N,))

    if return_pre:
        out, pre = res
        return _shape(out), _shape(pre)
    return _shape(res)


# ---------------------------------------------------------------------------
# Module wrappers (JAX equivalents of the PyTorch modules)
# ---------------------------------------------------------------------------
class LinearExcitability:
    def __init__(self, in_features, out_features, bias=True, excitability=False,
                 excit_buffer=False, dtype=jnp.float32, key=None):
        key = jax.random.PRNGKey(0) if key is None else key
        kw, kb = jax.random.split(key)
        stdv = 1.0 / math.sqrt(in_features)
        self.in_features = in_features
        self.out_features = out_features
        self.weight = jax.random.uniform(
            kw, (out_features, in_features), jnp.float32, -stdv, stdv).astype(dtype)
        # Kernel-side copy: transposed to (K, N) and K-padded to a multiple of
        # 128 ONCE at init — no per-forward transpose/pad of the static param.
        kp = _round_up(in_features, 128)
        self.weight_t = jnp.pad(self.weight.T, ((0, kp - in_features), (0, 0)))
        self.excitability = (jnp.ones((out_features,), jnp.float32)
                             if excitability else None)
        self.bias = (jax.random.uniform(kb, (out_features,), jnp.float32, -stdv, stdv)
                     if bias else None)
        self.excit_buffer = (jnp.ones((out_features,), jnp.float32)
                             if excit_buffer else None)

    def effective_excitability(self):
        if self.excit_buffer is None:
            return self.excitability
        if self.excitability is None:
            return self.excit_buffer
        return self.excitability * self.excit_buffer


def _apply_nl(act, x, negative_slope=0.01):
    if act == "relu":
        return jnp.maximum(x, 0.0)
    if act == "leakyrelu":
        return jnp.where(x >= 0.0, x, negative_slope * x)
    return x


class fc_layer:
    """JAX/Pallas equivalent of the PyTorch fc_layer forward pass."""

    def __init__(self, in_size, out_size, nl="relu", drop=0.0, bias=True,
                 batch_norm=False, excitability=False, excit_buffer=False,
                 gated=False, phantom=False, dtype=jnp.float32, key=None):
        key = jax.random.PRNGKey(0) if key is None else key
        k_lin, k_gw, k_gb = jax.random.split(key, 3)
        self.drop = drop            # TODO(synk): training-mode dropout (needs RNG plumbing); inference => identity.
        self.batch_norm = batch_norm
        self.gated = gated
        self.act = nl if isinstance(nl, str) else "relu"
        self.dtype = dtype
        self.linear = LinearExcitability(
            in_size, out_size, bias=False if batch_norm else bias,
            excitability=excitability, excit_buffer=excit_buffer,
            dtype=dtype, key=k_lin)
        if batch_norm:
            # TODO(synk): BatchNorm1d uses batch statistics (train mode) here; no running stats.
            self.bn_gamma = jnp.ones((out_size,), jnp.float32)
            self.bn_beta = jnp.zeros((out_size,), jnp.float32)
        if gated:
            stdv = 1.0 / math.sqrt(in_size)
            self.gate_weight = jax.random.uniform(
                k_gw, (out_size, in_size), jnp.float32, -stdv, stdv).astype(dtype)
            kp = _round_up(in_size, 128)
            self.gate_weight_t = jnp.pad(self.gate_weight.T,
                                         ((0, kp - in_size), (0, 0)))
            self.gate_bias = jax.random.uniform(
                k_gb, (out_size,), jnp.float32, -stdv, stdv)
        self.phantom = jnp.zeros((out_size,), jnp.float32) if phantom else None

    def __call__(self, x, return_pa=False, **kwargs):
        inp = x  # dropout is identity at inference (drop defaults to 0.0 anyway)
        exc = self.linear.effective_excitability()

        if not self.batch_norm and not self.gated:
            # Hot path: one fused kernel — matmul + excitability + (bias+phantom) + nl.
            b = self.linear.bias
            if self.phantom is not None:
                b = self.phantom if b is None else b + self.phantom
            return pallas_fc(inp, self.linear.weight_t, exc, b,
                             act=self.act, return_pre=return_pa)

        # General path: matmuls still run in the fused Pallas kernel; the extra
        # epilogue (BN / gating) is applied in plain JAX.
        pre = pallas_fc(inp, self.linear.weight_t, exc, self.linear.bias, act="none")
        if self.batch_norm:
            red_axes = tuple(range(pre.ndim - 1))
            mean = pre.mean(axis=red_axes)
            var = pre.var(axis=red_axes)
            pre = (pre - mean) / jnp.sqrt(var + 1e-5) * self.bn_gamma + self.bn_beta
        if self.gated:
            gate = pallas_fc(x, self.gate_weight_t, None, self.gate_bias, act="sigmoid")
            gated_pre = gate * pre
        else:
            gated_pre = pre
        if self.phantom is not None:
            gated_pre = gated_pre + self.phantom.astype(gated_pre.dtype)
        out = _apply_nl(self.act, gated_pre)
        return (out, gated_pre) if return_pa else out

    def list_init_layers(self):
        return [self.linear]


# ---------------------------------------------------------------------------
# Demo / self-check
# ---------------------------------------------------------------------------
if __name__ == "__main__":
    key = jax.random.PRNGKey(0)
    kx, kp1, kp2, kp3, kp4 = jax.random.split(key, 5)

    batch, seq, in_size, out_size = 2, 8, 32, 64
    x = jax.random.normal(kx, (batch, seq, in_size), dtype=jnp.float32)

    # 1) Default config: ReLU(x @ W^T + b), f32 path (precision=HIGHEST matmul).
    layer = fc_layer(in_size, out_size, nl="relu", bias=True, key=kp1)
    y = jax.block_until_ready(layer(x))
    pre_ref = (jnp.einsum("bsk,nk->bsn", x, layer.linear.weight,
                          precision=jax.lax.Precision.HIGHEST)
               + layer.linear.bias)
    ref = jnp.maximum(pre_ref, 0.0)
    assert y.shape == (batch, seq, out_size), y.shape
    assert y.dtype == x.dtype
    assert jnp.allclose(y, ref, atol=1e-2, rtol=1e-2), float(jnp.max(jnp.abs(y - ref)))

    # 2) return_pa + excit_buffer + phantom (still a single fused kernel).
    layer2 = fc_layer(in_size, out_size, nl="relu", bias=True,
                      excit_buffer=True, phantom=True, key=kp2)
    out2, pa2 = layer2(x, return_pa=True)
    jax.block_until_ready((out2, pa2))
    pre2_ref = (jnp.einsum("bsk,nk->bsn", x, layer2.linear.weight,
                           precision=jax.lax.Precision.HIGHEST)
                * layer2.linear.excit_buffer + layer2.linear.bias + layer2.phantom)
    assert jnp.allclose(pa2, pre2_ref, atol=1e-2, rtol=1e-2)
    assert jnp.allclose(out2, jnp.maximum(pre2_ref, 0.0), atol=1e-2, rtol=1e-2)

    # 3) bf16 fast path: weights stored as bf16, no f32 upcast of x / W.
    xb = x.astype(jnp.bfloat16)
    layer3 = fc_layer(in_size, out_size, nl="relu", bias=True,
                      dtype=jnp.bfloat16, key=kp3)
    y3 = jax.block_until_ready(layer3(xb))
    assert y3.dtype == jnp.bfloat16
    ref3 = jnp.maximum(
        jnp.einsum("bsk,nk->bsn", xb.astype(jnp.float32),
                   layer3.linear.weight.astype(jnp.float32))
        + layer3.linear.bias, 0.0)
    assert jnp.allclose(y3.astype(jnp.float32), ref3, atol=5e-2, rtol=5e-2)

    # 4) Gated path (two fused kernels + elementwise epilogue in plain JAX).
    layer4 = fc_layer(in_size, out_size, nl="relu", bias=True, gated=True, key=kp4)
    y4 = jax.block_until_ready(layer4(x))
    pre4 = (jnp.einsum("bsk,nk->bsn", x, layer4.linear.weight,
                       precision=jax.lax.Precision.HIGHEST) + layer4.linear.bias)
    gate4 = jax.nn.sigmoid(
        jnp.einsum("bsk,nk->bsn", x, layer4.gate_weight,
                   precision=jax.lax.Precision.HIGHEST) + layer4.gate_bias)
    ref4 = jnp.maximum(gate4 * pre4, 0.0)
    assert jnp.allclose(y4, ref4, atol=1e-2, rtol=1e-2)

    print("KERNEL_OK")
</pallas_src>

<mosaic_0001>
module attributes {stable_mosaic.version = 11 : i64} {
  func.func @kernel(%arg0: i32, %arg1: i32, %arg2: i32, %arg3: memref<16x128xf32, #tpu.memory_space<vmem>>, %arg4: memref<128x128xf32, #tpu.memory_space<vmem>>, %arg5: memref<1x128xf32, #tpu.memory_space<vmem>>, %arg6: memref<16x128xf32, #tpu.memory_space<vmem>>, %arg7: memref<16x128xf32, #tpu.memory_space<vmem>>) attributes {dimension_semantics = [#tpu.dimension_semantics<parallel>, #tpu.dimension_semantics<parallel>, #tpu.dimension_semantics<arbitrary>], iteration_bounds = array<i64: 1, 1, 1>, scalar_prefetch = 0 : i64, scratch_operands = 1 : i64, tpu.core_type = #tpu.core_type<tc>, window_params = [{transform_indices = @transform_0, window_bounds = array<i64: 16, 128>}, {transform_indices = @transform_1, window_bounds = array<i64: 128, 128>}, {transform_indices = @transform_2, window_bounds = array<i64: 1, 128>}, {transform_indices = @transform_3, window_bounds = array<i64: 16, 128>}]} {
    %c0_i32 = arith.constant 0 : i32
    %0 = arith.cmpi eq, %arg2, %c0_i32 : i32
    %1 = arith.extui %0 : i1 to i32
    %c0_i32_0 = arith.constant 0 : i32
    %2 = arith.cmpi ne, %1, %c0_i32_0 : i32
    scf.if %2 {
      %cst_10 = arith.constant 0.000000e+00 : f32
      %12 = vector.broadcast %cst_10 : f32 to vector<16x128xf32>
      %c0_11 = arith.constant 0 : index
      %c0_12 = arith.constant 0 : index
      %13 = vector.load %arg7[%c0_11, %c0_12] : memref<16x128xf32, #tpu.memory_space<vmem>>, vector<16x128xf32>
      tpu.vector_store %arg7[%c0_11, %c0_12], %12 {strides = array<i32>} : memref<16x128xf32, #tpu.memory_space<vmem>>, vector<16x128xf32>,
    } else {
    }
    %c0 = arith.constant 0 : index
    %c0_1 = arith.constant 0 : index
    %3 = vector.load %arg7[%c0, %c0_1] : memref<16x128xf32, #tpu.memory_space<vmem>>, vector<16x128xf32>
    %c0_2 = arith.constant 0 : index
    %c0_3 = arith.constant 0 : index
    %4 = vector.load %arg3[%c0_2, %c0_3] : memref<16x128xf32, #tpu.memory_space<vmem>>, vector<16x128xf32>
    %c0_4 = arith.constant 0 : index
    %c0_5 = arith.constant 0 : index
    %5 = vector.load %arg4[%c0_4, %c0_5] : memref<128x128xf32, #tpu.memory_space<vmem>>, vector<128x128xf32>
    %cst = arith.constant dense<0.000000e+00> : vector<16x128xf32>
    %6 = tpu.matmul %4, %5, %cst {dimension_numbers = #tpu.dot_dimension_numbers<[1], [0], [0], [1], [0, 0, 1, 1], [], []>, precision = #tpu.contract_precision<fp32>} : vector<16x128xf32>, vector<128x128xf32>, vector<16x128xf32> -> vector<16x128xf32>
    %7 = arith.addf %3, %6 : vector<16x128xf32>
    %c0_6 = arith.constant 0 : index
    %c0_7 = arith.constant 0 : index
    %8 = vector.load %arg7[%c0_6, %c0_7] : memref<16x128xf32, #tpu.memory_space<vmem>>, vector<16x128xf32>
    tpu.vector_store %arg7[%c0_6, %c0_7], %7 {strides = array<i32>} : memref<16x128xf32, #tpu.memory_space<vmem>>, vector<16x128xf32>,
    %c0_i32_8 = arith.constant 0 : i32
    %9 = arith.cmpi eq, %arg2, %c0_i32_8 : i32
    %10 = arith.extui %9 : i1 to i32
    %c0_i32_9 = arith.constant 0 : i32
    %11 = arith.cmpi ne, %10, %c0_i32_9 : i32
    scf.if %11 {
      %c0_10 = arith.constant 0 : index
      %c0_11 = arith.constant 0 : index
      %12 = vector.load %arg7[%c0_10, %c0_11] : memref<16x128xf32, #tpu.memory_space<vmem>>, vector<16x128xf32>
      %c0_12 = arith.constant 0 : index
      %c0_13 = arith.constant 0 : index
      %13 = vector.load %arg5[%c0_12, %c0_13] : memref<1x128xf32, #tpu.memory_space<vmem>>, vector<1x128xf32>
      %14 = vector.broadcast %13 : vector<1x128xf32> to vector<16x128xf32>
      %15 = arith.addf %12, %14 : vector<16x128xf32>
      %cst_14 = arith.constant 0.000000e+00 : f32
      %16 = vector.broadcast %cst_14 : f32 to vector<16x128xf32>
      %17 = arith.maximumf %15, %16 : vector<16x128xf32>
      %c0_15 = arith.constant 0 : index
      %c0_16 = arith.constant 0 : index
      %18 = vector.load %arg6[%c0_15, %c0_16] : memref<16x128xf32, #tpu.memory_space<vmem>>, vector<16x128xf32>
      tpu.vector_store %arg6[%c0_15, %c0_16], %17 {strides = array<i32>} : memref<16x128xf32, #tpu.memory_space<vmem>>, vector<16x128xf32>,
    } else {
    }
    return
  }
  func.func @transform_0(%arg0: i32, %arg1: i32, %arg2: i32) -> (i32, i32) {
    %c0_i32 = arith.constant 0 : i32
    return %arg0, %arg2 : i32, i32
  }
  func.func @transform_1(%arg0: i32, %arg1: i32, %arg2: i32) -> (i32, i32) {
    %c0_i32 = arith.constant 0 : i32
    return %arg2, %arg1 : i32, i32
  }
  func.func @transform_2(%arg0: i32, %arg1: i32, %arg2: i32) -> (i32, i32) {
    %c0_i32 = arith.constant 0 : i32
    %c0_i32_0 = arith.constant 0 : i32
    return %c0_i32, %arg1 : i32, i32
  }
  func.func @transform_3(%arg0: i32, %arg1: i32, %arg2: i32) -> (i32, i32) {
    %c0_i32 = arith.constant 0 : i32
    return %arg0, %arg1 : i32, i32
  }
}

</mosaic_0001>

<bundles_post_ra>
// kernel: tpu_custom_call.1
= control target key start
LH: loop header
LB: loop body
LE: loop exit
PB: predicated region body
PF: predicated region fallthrough
CT: control target
= control target key end

     0   :  { %s1669_s0 = inlined_call_operand.vmem [shape: f32[16,128], index: 0, kind: input, shape index: {}]   ;;  %s1670_s1 = inlined_call_operand.vmem [shape: f32[128,64], index: 1, kind: input, shape index: {}]   ;;  %s1671_s2 = inlined_call_operand.vmem [shape: f32[1,64], index: 2, kind: input, shape index: {}]   ;;  %s1672_s3 = inlined_call_operand.hbm [shape: f32[16,64], index: 3, kind: output, shape index: {}]  }
   0x1   :  { %v25_v0 = vld [vmem:[%s1670_s1] sm:$0xff]  ;;  %v26_v1 = vld [vmem:[%s1670_s1 + $0x8] sm:$0xff]  ;;  %v27_v2 = vld [vmem:[%s1670_s1 + $0x10] sm:$0xff] }
   0x2   :  { %v42_v3 = vand.u32 4294901760, %v25_v0  ;;  %v45_v4 = vand.u32 4294901760, %v26_v1  ;;  %v1346_v5 = vld [vmem:[%s1670_s1 + $0x18] sm:$0xff]  ;;  %v48_v6 = vand.u32 4294901760, %v27_v2  ;;  %v1351_v7 = vld [vmem:[%s1670_s1 + $0x20] sm:$0xff]  ;;  %v1356_v8 = vld [vmem:[%s1670_s1 + $0x28] sm:$0xff] }
   0x3   :  { %v51_v9 = vand.u32 4294901760, %v1346_v5  ;;  %v54_v11 = vand.u32 4294901760, %v1351_v7  ;;  %v57_v12 = vand.u32 4294901760, %v1356_v8  ;;  %v1368_v14 = vld [vmem:[%s1670_s1 + $0x30] sm:$0xff]  ;;  %v1373_v15 = vld [vmem:[%s1670_s1 + $0x38] sm:$0xff]  ;;  %v23_v16 = vld [vmem:[%s1669_s0] sm:$0xff] }
   0x4   :  { %v1359_v10 = vpack.c.bf16 %v45_v4, %v42_v3  ;;  %v1382_v17 = vand.u32 4294901760, %v23_v16 }
   0x5   :  { %v1363_v13 = vpack.c.bf16 %v51_v9, %v48_v6 }
   0x6   :  { %1083 = vmatprep.subr.bf16.mxu1 %v1359_v10  ;;  %1179 = vmatprep.subr.bf16.mxu0 %v1359_v10 }
   0x7   :  { %1085 = vmatpush3.bf16.msra.mxu1 %v1359_v10  ;;  %1181 = vmatpush3.bf16.msra.mxu0 %v1359_v10 }
   0x8   :  { %8 = vsyncpa [#allocation4], 0  ;;  %1087 = vmatprep.subr.bf16.mxu1 %v1363_v13  ;;  %1183 = vmatprep.subr.bf16.mxu0 %v1363_v13  ;;  %v1390_v18 = vpack.c.bf16 %v57_v12, %v54_v11  ;;  %v60_v19 = vand.u32 4294901760, %v1368_v14  ;;  %v63_v20 = vand.u32 4294901760, %v1373_v15  ;;  %v1397_v21 = vld [vmem:[%s1670_s1 + $0x40] sm:$0xff]  ;;  %v1402_v22 = vld [vmem:[%s1670_s1 + $0x48] sm:$0xff]  ;;  %v1405_v23 = vsub.f32 %v23_v16, %v1382_v17 }
   0x9   :  { %v66_v26 = vand.u32 4294901760, %v1397_v21  ;;  %v69_v27 = vand.u32 4294901760, %v1402_v22  ;;  %v1423_v28 = vld [vmem:[%s1670_s1 + $0x50] sm:$0xff]  ;;  %v1428_v29 = vld [vmem:[%s1670_s1 + $0x58] sm:$0xff]  ;;  %v24_v33 = vld [vmem:[%s1669_s0 + $0x8] sm:$0xff]  ;;  %v1456_v38 = vsub.f32 %v25_v0, %v42_v3  ;;  %v1458_v39 = vsub.f32 %v26_v1, %v45_v4  ;;  %s1311_s21 = smov [#allocation3]  }
   0xa   :  { %v124_v24 = vand.u32 4294901760, %v1405_v23  ;;  %v1416_v25 = vpack.c.bf16 %v63_v20, %v60_v19  ;;  %v72_v31 = vand.u32 4294901760, %v1423_v28  ;;  %v75_v35 = vand.u32 4294901760, %v1428_v29  ;;  %v1449_v36 = vld [vmem:[%s1670_s1 + $0x60] sm:$0xff]  ;;  %v1454_v37 = vld [vmem:[%s1670_s1 + $0x68] sm:$0xff]  ;;  %v1469_v43 = vld [vmem:[%s1670_s1 + $0x70] sm:$0xff] }
   0xb   :  { %1089 = vmatpush3.bf16.msra.mxu1 %v1363_v13  ;;  %1185 = vmatpush3.bf16.msra.mxu0 %v1363_v13  ;;  %v1443_v34 = vpack.c.bf16 %v69_v27, %v66_v26  ;;  %v1460_v40 = vand.u32 4294901760, %v24_v33  ;;  %v78_v41 = vand.u32 4294901760, %v1449_v36  ;;  %v81_v42 = vand.u32 4294901760, %v1454_v37  ;;  %v1474_v44 = vld [vmem:[%s1670_s1 + $0x78] sm:$0xff]  ;;  %s752_s22 = sshll.u32 %s1311_s21, 4  ;;  %s753_s22 = int_to_ptr.vmem [resolvable:$true] %s752_s22 }
   0xc   :  { %1091 = vmatprep.subr.bf16.mxu1 %v1390_v18  ;;  %1187 = vmatprep.subr.bf16.mxu0 %v1390_v18  ;;  %v125_v30 = vsub.f32 %v1405_v23, %v124_v24  ;;  %v1476_v45 = vsub.f32 %v27_v2, %v48_v6  ;;  %v1484_v46 = vpack.c.bf16 %v75_v35, %v72_v31  ;;  %v145_v47 = vand.u32 4294901760, %v1456_v38  ;;  %s1287_s23 = scalar_lea.vmem %s753_s22, 256  ;;  %p1292_p1 = scmp.lt.s32.totalorder %s753_s22, %s753_s22 }
   0xd   :  { %1009 = vmatprep.mubr.f32.mxu0 %v124_v24  ;;  %v152_v48 = vand.u32 4294901760, %v1458_v39  ;;  %v1489_v49 = vsub.f32 %v1346_v5, %v51_v9  ;;  %v84_v50 = vand.u32 4294901760, %v1469_v43  ;;  %v87_v51 = vand.u32 4294901760, %v1474_v44  ;;  %p1288_p0 = scmp.ne.s32.totalorder %s753_s22, %s1287_s23  ;;  %p1293_p2 = scmp.lt.s32.totalorder %s1287_s23, %s1287_s23 }
   0xe   :  { %v126_v32 = vand.u32 4294901760, %v125_v30  ;;  %v1494_v52 = vsub.f32 %v24_v33, %v1460_v40  ;;  %v1502_v53 = vpack.c.bf16 %v81_v42, %v78_v41  ;;  %v159_v54 = vand.u32 4294901760, %v1476_v45 }
   0xf   :  { %1093 = vmatpush3.bf16.msra.mxu1 %v1390_v18  ;;  %1189 = vmatpush3.bf16.msra.mxu0 %v1390_v18  ;;  %v1508_v55 = vsub.f32 %v1351_v7, %v54_v11  ;;  %v146_v56 = vsub.f32 %v1456_v38, %v145_v47  ;;  %v153_v57 = vsub.f32 %v1458_v39, %v152_v48  ;;  %v166_v58 = vand.u32 4294901760, %v1489_v49  ;;  %p1294_p3 = por %p1293_p2, %p1292_p1 }
  0x10   :  { %1095 = vmatprep.subr.bf16.mxu1 %v1416_v25  ;;  %1191 = vmatprep.subr.bf16.mxu0 %v1416_v25  ;;  %v1518_v59 = vsub.f32 %v1356_v8, %v57_v12  ;;  %v1524_v60 = vpack.c.bf16 %v87_v51, %v84_v50  ;;  %v134_v61 = vand.u32 4294901760, %v1494_v52  ;;  %v160_v62 = vsub.f32 %v1476_v45, %v159_v54 }
  0x11   :  { %904 = vmatprep.mubr.f32.mxu1 %v126_v32  ;;  %v173_v63 = vand.u32 4294901760, %v1508_v55  ;;  %v1534_v0 = vsub.f32 %v1368_v14, %v60_v19  ;;  %v1539_v1 = vsub.f32 %v1373_v15, %v63_v20  ;;  %v147_v2 = vand.u32 4294901760, %v146_v56  ;;  %p1295_p4 = pnand %p1294_p3, %p1288_p0 }
  0x12   :  { %v154_v3 = vand.u32 4294901760, %v153_v57  ;;  %v167_v4 = vsub.f32 %v1489_v49, %v166_v58  ;;  %v180_v5 = vand.u32 4294901760, %v1518_v59  ;;  %v1210_v6 = vpack.c.bf16 %v152_v48, %v145_v47 }
  0x13   :  { %1097 = vmatpush3.bf16.msra.mxu1 %v1416_v25  ;;  %1193 = vmatpush3.bf16.msra.mxu0 %v1416_v25  ;;  %v135_v7 = vsub.f32 %v1494_v52, %v134_v61  ;;  %v1549_v8 = vsub.f32 %v1397_v21, %v66_v26  ;;  %v161_v9 = vand.u32 4294901760, %v160_v62  ;;  %v174_v11 = vsub.f32 %v1508_v55, %v173_v63 }
  0x14   :  { %1099 = vmatprep.subr.bf16.mxu1 %v1443_v34  ;;  %1195 = vmatprep.subr.bf16.mxu0 %v1443_v34  ;;  %v187_v12 = vand.u32 4294901760, %v1534_v0  ;;  %v194_v14 = vand.u32 4294901760, %v1539_v1  ;;  %v1114_v15 = vpack.c.bf16 %v154_v3, %v147_v2  ;;  %v168_v16 = vand.u32 4294901760, %v167_v4 }
  0x15   :  { %v181_v19 = vsub.f32 %v1518_v59, %v180_v5  ;;  %v1562_v20 = vsub.f32 %v1402_v22, %v69_v27  ;;  %v136_v21 = vand.u32 4294901760, %v135_v7  ;;  %v1214_v24 = vpack.c.bf16 %v166_v58, %v159_v54 }
  0x16   :  { %v201_v26 = vand.u32 4294901760, %v1549_v8  ;;  %v1568_v30 = vsub.f32 %v1423_v28, %v72_v31  ;;  %v188_v32 = vsub.f32 %v1534_v0, %v187_v12  ;;  %v195_v33 = vsub.f32 %v1539_v1, %v194_v14 }
  0x17   :  { %1101 = vmatpush3.bf16.msra.mxu1 %v1443_v34  ;;  %1197 = vmatpush3.bf16.msra.mxu0 %v1443_v34  ;;  %v1577_v22 = vsub.f32 %v1428_v29, %v75_v35  ;;  %v1118_v27 = vpack.c.bf16 %v168_v16, %v161_v9  ;;  %v175_v47 = vand.u32 4294901760, %v174_v11  ;;  %v182_v48 = vand.u32 4294901760, %v181_v19 }
  0x18   :  { %1103 = vmatprep.subr.bf16.mxu1 %v1484_v46  ;;  %1199 = vmatprep.subr.bf16.mxu0 %v1484_v46  ;;  %v208_v28 = vand.u32 4294901760, %v1562_v20  ;;  %v1218_v31 = vpack.c.bf16 %v180_v5, %v173_v63  ;;  %v202_v54 = vsub.f32 %v1549_v8, %v201_v26  ;;  %v1584_v56 = vsub.f32 %v1449_v36, %v78_v41 }
  0x19   :  { %v189_v29 = vand.u32 4294901760, %v188_v32  ;;  %v196_v35 = vand.u32 4294901760, %v195_v33  ;;  %v215_v57 = vand.u32 4294901760, %v1568_v30  ;;  %v222_v58 = vand.u32 4294901760, %v1577_v22 }
  0x1a   :  { %v1122_v62 = vpack.c.bf16 %v182_v48, %v175_v47  ;;  %v1592_v63 = vsub.f32 %v1454_v37, %v81_v42  ;;  %v1222_v36 = vpack.c.bf16 %v194_v14, %v187_v12  ;;  %v203_v41 = vand.u32 4294901760, %v202_v54 }
  0x1b   :  { %1105 = vmatpush3.bf16.msra.mxu1 %v1484_v46  ;;  %1201 = vmatpush3.bf16.msra.mxu0 %v1484_v46  ;;  %v1126_v2 = vpack.c.bf16 %v196_v35, %v189_v29  ;;  %v216_v3 = vsub.f32 %v1568_v30, %v215_v57  ;;  %v223_v4 = vsub.f32 %v1577_v22, %v222_v58  ;;  %v229_v5 = vand.u32 4294901760, %v1584_v56 }
  0x1c   :  { %1107 = vmatprep.subr.bf16.mxu1 %v1502_v53  ;;  %1203 = vmatprep.subr.bf16.mxu0 %v1502_v53  ;;  %v236_v37 = vand.u32 4294901760, %v1592_v63  ;;  %v1603_v42 = vsub.f32 %v1469_v43, %v84_v50  ;;  %v1608_v7 = vsub.f32 %v1474_v44, %v87_v51  ;;  %v1226_v9 = vpack.c.bf16 %v208_v28, %v201_v26 }
  0x1d   :  { %v217_v11 = vand.u32 4294901760, %v216_v3  ;;  %v224_v12 = vand.u32 4294901760, %v223_v4  ;;  %v230_v14 = vsub.f32 %v1584_v56, %v229_v5  ;;  %v1230_v51 = vpack.c.bf16 %v222_v58, %v215_v57 }
  0x1e   :  { %v237_v16 = vsub.f32 %v1592_v63, %v236_v37  ;;  %v243_v43 = vand.u32 4294901760, %v1603_v42  ;;  %v250_v50 = vand.u32 4294901760, %v1608_v7  ;;  %v1234_v33 = vpack.c.bf16 %v236_v37, %v229_v5 }
  0x1f   :  { %1109 = vmatpush3.bf16.msra.mxu1 %v1502_v53  ;;  %1205 = vmatpush3.bf16.msra.mxu0 %v1502_v53  ;;  %v1134_v44 = vpack.c.bf16 %v224_v12, %v217_v11  ;;  %v231_v19 = vand.u32 4294901760, %v230_v14  ;;  %v1150_v54 = vpack.c.bf16 %v1489_v49, %v1476_v45 }
  0x20   :  { %1111 = vmatprep.subr.bf16.mxu1 %v1524_v60  ;;  %1207 = vmatprep.subr.bf16.mxu0 %v1524_v60  ;;  %v251_v26 = vsub.f32 %v1608_v7, %v250_v50 }
  0x22   :  { %v252_v47 = vand.u32 4294901760, %v251_v26 }
  0x23   :  { %1113 = vmatpush3.bf16.msra.mxu1 %v1524_v60  ;;  %1209 = vmatpush3.bf16.msra.mxu0 %v1524_v60 }
  0x24   :  { %1115 = vmatprep.subr.bf16.mxu1 %v1114_v15  ;;  %1211 = vmatprep.subr.bf16.mxu0 %v1210_v6 }
  0x26   :  { %905 = vmatmul.mubr.f32.vlgmr.msra.gmra.mrb[0].mxu1 %v136_v21  ;;  %1010 = vmatmul.mubr.f32.vlgmr.msra.gmra.mrb[0].mxu0 %v134_v61  ;;  %v209_v61 = vsub.f32 %v1562_v20, %v208_v28  ;;  %v238_v21 = vand.u32 4294901760, %v237_v16  ;;  %v1238_v28 = vpack.c.bf16 %v250_v50, %v243_v43 }
  0x27   :  { %1117 = vmatpush3.bf16.msra.mxu1 %v1114_v15  ;;  %1213 = vmatpush3.bf16.msra.mxu0 %v1210_v6 }
  0x28   :  { %1119 = vmatprep.subr.bf16.mxu1 %v1118_v27  ;;  %1215 = vmatprep.subr.bf16.mxu0 %v1214_v24  ;;  %v210_v6 = vand.u32 4294901760, %v209_v61  ;;  %v1138_v32 = vpack.c.bf16 %v238_v21, %v231_v19 }
  0x29   :  { %939 = vmatprep.mubr.f32.mxu1 %v1382_v17  ;;  %1044 = vmatprep.mubr.f32.mxu0 %v1382_v17 }
  0x2a   :  { %v1130_v15 = vpack.c.bf16 %v210_v6, %v203_v41 }
  0x2b   :  { %1121 = vmatpush3.bf16.msra.mxu1 %v1118_v27  ;;  %1217 = vmatpush3.bf16.msra.mxu0 %v1214_v24  ;;  %v244_v24 = vsub.f32 %v1603_v42, %v243_v43 }
  0x2c   :  { %1123 = vmatprep.subr.bf16.mxu1 %v1122_v62  ;;  %1219 = vmatprep.subr.bf16.mxu0 %v1218_v31 }
  0x2d   :  { %v245_v27 = vand.u32 4294901760, %v244_v24 }
  0x2f   :  { %1125 = vmatpush3.bf16.msra.mxu1 %v1122_v62  ;;  %1221 = vmatpush3.bf16.msra.mxu0 %v1218_v31  ;;  %v1142_v48 = vpack.c.bf16 %v252_v47, %v245_v27  ;;  %v1146_v31 = vpack.c.bf16 %v1458_v39, %v1456_v38  ;;  %v1154_v38 = vpack.c.bf16 %v1518_v59, %v1508_v55 }
  0x30   :  { %1127 = vmatprep.subr.bf16.mxu1 %v1126_v2  ;;  %1223 = vmatprep.subr.bf16.mxu0 %v1222_v36  ;;  %v1158_v39 = vpack.c.bf16 %v1539_v1, %v1534_v0 }
  0x33   :  { %1129 = vmatpush3.bf16.msra.mxu1 %v1126_v2  ;;  %1225 = vmatpush3.bf16.msra.mxu0 %v1222_v36 }
  0x34   :  { %1131 = vmatprep.subr.bf16.mxu1 %v1130_v15  ;;  %1227 = vmatprep.subr.bf16.mxu0 %v1226_v9 }
  0x37   :  { %1133 = vmatpush3.bf16.msra.mxu1 %v1130_v15  ;;  %1229 = vmatpush3.bf16.msra.mxu0 %v1226_v9 }
  0x38   :  { %1135 = vmatprep.subr.bf16.mxu1 %v1134_v44  ;;  %1231 = vmatprep.subr.bf16.mxu0 %v1230_v51 }
  0x3b   :  { %1137 = vmatpush3.bf16.msra.mxu1 %v1134_v44  ;;  %1233 = vmatpush3.bf16.msra.mxu0 %v1230_v51 }
  0x3c   :  { %1139 = vmatprep.subr.bf16.mxu1 %v1138_v32  ;;  %1235 = vmatprep.subr.bf16.mxu0 %v1234_v33 }
  0x3f   :  { %1141 = vmatpush3.bf16.msra.mxu1 %v1138_v32  ;;  %1237 = vmatpush3.bf16.msra.mxu0 %v1234_v33 }
  0x40   :  { %1143 = vmatprep.subr.bf16.mxu1 %v1142_v48  ;;  %1239 = vmatprep.subr.bf16.mxu0 %v1238_v28 }
  0x43   :  { %1145 = vmatpush3.bf16.msra.mxu1 %v1142_v48  ;;  %1241 = vmatpush3.bf16.msra.mxu0 %v1238_v28 }
  0x44   :  { %1147 = vmatprep.subr.bf16.mxu1 %v1146_v31  ;;  %1243 = vmatprep.subr.bf16.mxu0 %v1359_v10 }
  0x46   :  { %940 = vmatmul.mubr.f32.vlgmr.msra.gmra.mrb[0].mxu1 %v1460_v40  ;;  %1045 = vmatmul.mubr.f32.vlgmr.msra.gmra.mrb[0].mxu0 %v1460_v40 }
  0x47   :  { %1149 = vmatpush3.bf16.msra.mxu1 %v1146_v31  ;;  %1245 = vmatpush3.bf16.msra.mxu0 %v1359_v10  ;;  %v1162_v10 = vpack.c.bf16 %v1562_v20, %v1549_v8 }
  0x48   :  { %1151 = vmatprep.subr.bf16.mxu1 %v1150_v54  ;;  %1247 = vmatprep.subr.bf16.mxu0 %v1363_v13 }
  0x49   :  { %974 = vmatprep.mubr.f32.mxu1 %v1405_v23  ;;  %1079 = vmatprep.mubr.f32.mxu0 %v1382_v17  ;;  %v1170_v17 = vpack.c.bf16 %v1592_v63, %v1584_v56 }
  0x4b   :  { %1153 = vmatpush3.bf16.msra.mxu1 %v1150_v54  ;;  %1249 = vmatpush3.bf16.msra.mxu0 %v1363_v13  ;;  %v1166_v13 = vpack.c.bf16 %v1577_v22, %v1568_v30 }
  0x4c   :  { %1155 = vmatprep.subr.bf16.mxu1 %v1154_v38  ;;  %1251 = vmatprep.subr.bf16.mxu0 %v1390_v18 }
  0x4f   :  { %1157 = vmatpush3.bf16.msra.mxu1 %v1154_v38  ;;  %1253 = vmatpush3.bf16.msra.mxu0 %v1390_v18  ;;  %v1174_v18 = vpack.c.bf16 %v1608_v7, %v1603_v42 }
  0x50   :  { %1159 = vmatprep.subr.bf16.mxu1 %v1158_v39  ;;  %1255 = vmatprep.subr.bf16.mxu0 %v1416_v25 }
  0x53   :  { %1161 = vmatpush3.bf16.msra.mxu1 %v1158_v39  ;;  %1257 = vmatpush3.bf16.msra.mxu0 %v1416_v25 }
  0x54   :  { %1163 = vmatprep.subr.bf16.mxu1 %v1162_v10  ;;  %1259 = vmatprep.subr.bf16.mxu0 %v1443_v34 }
  0x57   :  { %1165 = vmatpush3.bf16.msra.mxu1 %v1162_v10  ;;  %1261 = vmatpush3.bf16.msra.mxu0 %v1443_v34  ;;  %v763_v34 = vld [vmem:[%s1671_s2] ss:$0 sm:$0xff] }
  0x58   :  { %1167 = vmatprep.subr.bf16.mxu1 %v1166_v13  ;;  %1263 = vmatprep.subr.bf16.mxu0 %v1484_v46 }
  0x5b   :  { %1169 = vmatpush3.bf16.msra.mxu1 %v1166_v13  ;;  %1265 = vmatpush3.bf16.msra.mxu0 %v1484_v46 }
  0x5c   :  { %1171 = vmatprep.subr.bf16.mxu1 %v1170_v17  ;;  %1267 = vmatprep.subr.bf16.mxu0 %v1502_v53 }
  0x5f   :  { %1173 = vmatpush3.bf16.msra.mxu1 %v1170_v17  ;;  %1269 = vmatpush3.bf16.msra.mxu0 %v1502_v53 }
  0x60   :  { %1175 = vmatprep.subr.bf16.mxu1 %v1174_v18  ;;  %1271 = vmatprep.subr.bf16.mxu0 %v1524_v60 }
  0x63   :  { %1177 = vmatpush3.bf16.msra.mxu1 %v1174_v18  ;;  %1273 = vmatpush3.bf16.msra.mxu0 %v1524_v60 }
  0x66   :  { %975 = vmatmul.mubr.f32.vlgmr.msra.gmra.mrb[0].mxu1 %v1494_v52  ;;  %1080 = vmatmul.mubr.f32.vlgmr.msra.gmra.mrb[0].mxu0 %v1460_v40 }
 0x139   :  { %v976_v23 = vpop.f32.mrb[0].mxu1  ;;  %v1081_v25 = vpop.f32.mrb[0].mxu0 }
 0x13a   :  { %v1274_v45 = vadd.f32 %v1081_v25, %v976_v23  ;;  %v399_v46 = vpop.f32.mrb[1].mxu1  ;;  %v715_v49 = vpop.f32.mrb[1].mxu0 }
 0x13b   :  { %v1275_v53 = vadd.f32 %v715_v49, %v399_v46 }
 0x13c   :  { %v742_v55 = vadd.f32 %v1274_v45, %v763_v34 }
 0x13d   :  { %v741_v59 = vadd.f32 %v1275_v53, %v763_v34 }
 0x13e   :  { %v744_v0 = vmax.f32 %v742_v55, 0.0 }
 0x13f   :  { %v743_v60 = vmax.f32 %v741_v59, 0.0 }
 0x140   :  { %746 = vst [vmem:[#allocation3 + $0x8] sm:$0xff] %v744_v0 }
 0x141   :  { %745 = vst [vmem:[#allocation3] sm:$0xff] %v743_v60 }
 0x142   :  { %1298 = shalt.err (!%p1295_p4)
}
 0x143   :  { %s1299_s25 = scalar_lea.hbm %s1672_s3, 256 }
 0x144   :  { %p1300_p5 = scmp.ne.s32.totalorder %s1672_s3, %s1299_s25  ;;  %p1303_p6 = scmp.lt.u32.totalorder %s1299_s25, %s1672_s3 }
 0x146   :  { %p1305_p7 = pnand %p1303_p6, %p1300_p5 }
 0x148   :  { %1308 = shalt.err (!%p1305_p7)
}
 0x149   :  { %s1312_s30 = smov 128   ;;  %s1313_s4 = smov 8  }
 0x14a   :  { %758 = dma.vmem_to_hbm [thread:$0]  %s753_s22, 256, %s1672_s3, [#allocation4], %s1312_s30, %s1312_s30, %s1313_s4  }
 0x14b   :  { %1309 = dma.done.wait [#allocation4], 256  }
 0x14c   :  { %1310 = vsyncadd [#allocation4], 4294967040 }
 0x14d   :  { %762 = vsyncpa [#allocation4], 1 }

</bundles_post_ra>
